<compile_context>
chip_gen: v7x
topology: tpu7x:2x2x1
jax: 0.10.0
libtpu: 0.0.40
codegen_flags: <defaults>
</compile_context>

<pallas_src>
from functools import partial

import jax
import jax.numpy as jnp
from jax.experimental import pallas as pl
from jax.experimental.pallas import tpu as pltpu


def _round_up(x, m):
    return ((x + m - 1) // m) * m


def _iou_stats_kernel(x_ref, t_ref, inter_ref, pc_ref, *,
                      tile_hw, hw, n_classes, tiles_per_chunk, need_mask):
    s_idx = pl.program_id(1)                 # parallel spatial-chunk index
    k_idx = pl.program_id(2)                 # inner spatial-tile index (reduction)
    kk = s_idx * tiles_per_chunk + k_idx     # absolute spatial-tile index

    @pl.when(k_idx == 0)
    def _init():
        inter_ref[...] = jnp.zeros_like(inter_ref)
        pc_ref[...] = jnp.zeros_like(pc_ref)

    x = x_ref[...].astype(jnp.float32)       # (C, T) logits, upcast in-kernel
    t_raw = t_ref[...].astype(jnp.int32)     # (1, T) labels, cast in-kernel
    C, T = x.shape

    # Numerically-stable softmax over the class (sublane) axis.
    m = jnp.max(x, axis=0, keepdims=True)                  # (1, T)  XLU
    e = jnp.exp(x - m)                                     # (C, T)  EUP
    z = jnp.sum(e, axis=0, keepdims=True)                  # (1, T)  XLU
    r = pl.reciprocal(z, approx=True)                      # EUP vrcp (free slot)
    r = r * (2.0 - z * r)                                  # 1 Newton step on (1,T)
    p = e * r                                              # (C, T)

    # One-hot via broadcast compare against a (C, 1) sublane iota (essentially
    # free; no (C, T) iota regenerated per grid step).
    class_col = jax.lax.broadcasted_iota(jnp.int32, (C, 1), 0)

    def accumulate(p_v, t_v):
        onehot = (t_v == class_col)                        # (C, T) bool
        inter = jnp.where(onehot, p_v, 0.0)                # (C, T)
        onehot_f = onehot.astype(jnp.float32)              # (C, T)
        # Fold the tile into lane-aligned (C, 128) accumulators with pure VPU
        # adds over 128-lane groups (no cross-lane XLU reduce in the hot loop).
        inter_acc = inter_ref[...]
        pc_acc = pc_ref[...]
        for j in range(T // 128):
            sl = slice(j * 128, (j + 1) * 128)
            inter_acc = inter_acc + inter[:, sl]
            pc_acc = pc_acc + (p_v[:, sl] + onehot_f[:, sl])
        inter_ref[...] = inter_acc
        pc_ref[...] = pc_acc

    if need_mask:
        tile_end = (kk + 1) * tile_hw

        @pl.when(tile_end <= hw)             # fully-valid tile: fast path
        def _fast():
            accumulate(p, t_raw)

        @pl.when(tile_end > hw)              # last / overrun tile: mask padding
        def _masked():
            lane = jax.lax.broadcasted_iota(jnp.int32, (1, T), 1)
            valid = (kk * tile_hw + lane) < hw             # (1, T)
            # where (not multiply): padded logits may have produced NaN/Inf.
            accumulate(jnp.where(valid, p, 0.0),
                       jnp.where(valid, t_raw, n_classes))
    else:
        accumulate(p, t_raw)


def _choose_tile(hw, c, x_itemsize, t_itemsize,
                 vmem_budget_bytes=32 * 1024 * 1024,
                 max_tile=8192):
    """Largest 128-aligned lane tile whose working set (double-buffered
    inputs + ~7 f32/mask (C, T) in-kernel temporaries) fits a conservative
    budget sized for v7x (64 MiB physical VMEM).  Tiles >= ~2048 lanes are
    already at the HBM roofline, so we also cap at 8192."""
    per_lane = 2 * (c * x_itemsize + t_itemsize) + 7 * c * 4 + 16
    cap = vmem_budget_bytes // per_lane
    cap = max(128, min(max_tile, (cap // 128) * 128))
    return min(cap, _round_up(hw, 128))


def mm_iou_loss(inputs, target, n_classes, *, tile_hw=None,
                n_parallel_chunks=None,
                vmem_limit_bytes=48 * 1024 * 1024):
    """inputs: (N, C, H, W) float logits; target: (N, H, W) integer labels.

    Labels are accepted in their narrowest dtype (uint8/int8/int32) and cast
    in-kernel; logits stay in their HBM dtype (bf16 passes straight through).
    """
    N, C, H, W = inputs.shape
    assert C == n_classes
    HW = H * W

    x = inputs.reshape(N, C, HW)           # free reshape, native dtype in HBM
    t = target.reshape(N, 1, HW)           # free reshape, no astype pass

    if tile_hw is None:
        tile_hw = _choose_tile(HW, C, jnp.dtype(x.dtype).itemsize,
                               jnp.dtype(t.dtype).itemsize)
    assert tile_hw % 128 == 0, "tile_hw must be a multiple of 128"

    num_tiles = (HW + tile_hw - 1) // tile_hw

    if n_parallel_chunks is None:
        # Keep both v7x TensorCores busy even when N == 1.
        n_parallel_chunks = 1 if N >= 2 else min(2, num_tiles)
    S = max(1, min(n_parallel_chunks, num_tiles))
    K = (num_tiles + S - 1) // S

    # Masking is needed for a ragged last tile and/or overrun (clamped) tiles
    # when num_tiles does not divide evenly across the S chunks.
    need_mask = (HW % tile_hw != 0) or (S * K != num_tiles)

    if S * K == num_tiles:
        def spatial_map(n, s, k):
            return (n, 0, s * K + k)
    else:
        def spatial_map(n, s, k):
            return (n, 0, jnp.minimum(s * K + k, num_tiles - 1))

    kernel = partial(_iou_stats_kernel, tile_hw=tile_hw, hw=HW,
                     n_classes=n_classes, tiles_per_chunk=K,
                     need_mask=need_mask)

    inter4, pc4 = pl.pallas_call(
        kernel,
        out_shape=(jax.ShapeDtypeStruct((N, S, C, 128), jnp.float32),
                   jax.ShapeDtypeStruct((N, S, C, 128), jnp.float32)),
        grid_spec=pltpu.PrefetchScalarGridSpec(
            num_scalar_prefetch=0,
            grid=(N, S, K),
            in_specs=[
                pl.BlockSpec((None, C, tile_hw), spatial_map),   # logits
                pl.BlockSpec((None, 1, tile_hw), spatial_map),   # labels
            ],
            out_specs=(
                pl.BlockSpec((None, None, C, 128), lambda n, s, k: (n, s, 0, 0)),
                pl.BlockSpec((None, None, C, 128), lambda n, s, k: (n, s, 0, 0)),
            ),
        ),
        compiler_params=pltpu.CompilerParams(
            dimension_semantics=("parallel", "parallel", "arbitrary"),
            vmem_limit_bytes=vmem_limit_bytes),
    )(x, t)

    # Tiny finish in plain JAX (matches the PyTorch tail exactly).
    inter = inter4.sum(axis=(1, 3))                        # (N, C)
    pc = pc4.sum(axis=(1, 3))                              # (N, C): sum(p) + count
    union = pc - inter                                     # p + onehot - p*onehot
    iou = inter / (union + 1e-8)
    return -jnp.min(iou) - jnp.mean(iou)


def _ref_loss(inputs, target, n_classes):
    """Pure-JAX reference mirroring the PyTorch module."""
    N = inputs.shape[0]
    p = jax.nn.softmax(inputs.astype(jnp.float32), axis=1)
    onehot = jax.nn.one_hot(target, n_classes, axis=1, dtype=jnp.float32)
    inter = (p * onehot).reshape(N, n_classes, -1).sum(-1)
    union = (p + onehot - p * onehot).reshape(N, n_classes, -1).sum(-1)
    iou = inter / (union + 1e-8)
    return -jnp.min(iou) - jnp.mean(iou)


if __name__ == "__main__":
    key = jax.random.PRNGKey(0)
    ks = jax.random.split(key, 6)

    # Case 1: single full tile (HW = 256), batch axis drives megacore.
    N, C, H, W = 2, 4, 16, 16
    x1 = jax.random.normal(ks[0], (N, C, H, W), dtype=jnp.float32)
    t1 = jax.random.randint(ks[1], (N, H, W), 0, C, dtype=jnp.int32)
    loss1 = jax.block_until_ready(
        jax.jit(lambda a, b: mm_iou_loss(a, b, C))(x1, t1))
    ref1 = _ref_loss(x1, t1, C)
    assert jnp.allclose(loss1, ref1, atol=2e-5, rtol=2e-5), (loss1, ref1)

    # Case 2: multi-tile path with masked remainder (HW = 320, tile = 128).
    H2, W2 = 16, 20
    x2 = jax.random.normal(ks[2], (N, C, H2, W2), dtype=jnp.float32)
    t2 = jax.random.randint(ks[3], (N, H2, W2), 0, C, dtype=jnp.int32)
    loss2 = jax.block_until_ready(
        jax.jit(lambda a, b: mm_iou_loss(a, b, C, tile_hw=128))(x2, t2))
    ref2 = _ref_loss(x2, t2, C)
    assert jnp.allclose(loss2, ref2, atol=2e-5, rtol=2e-5), (loss2, ref2)

    # Case 3: N = 1 -> spatial chunks become the second parallel axis
    # (3 tiles over 2 chunks exercises the clamped + fully-masked overrun tile).
    H3, W3 = 16, 24
    x3 = jax.random.normal(ks[4], (1, C, H3, W3), dtype=jnp.float32)
    t3 = jax.random.randint(ks[5], (1, H3, W3), 0, C, dtype=jnp.int32)
    loss3 = jax.block_until_ready(
        jax.jit(lambda a, b: mm_iou_loss(a, b, C, tile_hw=128))(x3, t3))
    ref3 = _ref_loss(x3, t3, C)
    assert jnp.allclose(loss3, ref3, atol=2e-5, rtol=2e-5), (loss3, ref3)

    print("KERNEL_OK")
</pallas_src>

<mosaic_0001>
module attributes {stable_mosaic.version = 11 : i64} {
  func.func @_iou_stats_kernel(%arg0: i32, %arg1: i32, %arg2: i32, %arg3: memref<1x4x256xf32, #tpu.memory_space<vmem>>, %arg4: memref<1x1x256xi32, #tpu.memory_space<vmem>>, %arg5: memref<1x1x4x128xf32, #tpu.memory_space<vmem>>, %arg6: memref<1x1x4x128xf32, #tpu.memory_space<vmem>>) attributes {dimension_semantics = [#tpu.dimension_semantics<parallel>, #tpu.dimension_semantics<parallel>, #tpu.dimension_semantics<arbitrary>], iteration_bounds = array<i64: 2, 1, 1>, scalar_prefetch = 0 : i64, scratch_operands = 0 : i64, tpu.core_type = #tpu.core_type<tc>, window_params = [{transform_indices = @transform_0, window_bounds = array<i64: 1, 4, 256>}, {transform_indices = @transform_1, window_bounds = array<i64: 1, 1, 256>}, {transform_indices = @transform_2, window_bounds = array<i64: 1, 1, 4, 128>}, {transform_indices = @transform_3, window_bounds = array<i64: 1, 1, 4, 128>}]} {
    %c0_i32 = arith.constant 0 : i32
    %0 = arith.cmpi eq, %arg2, %c0_i32 : i32
    %1 = arith.extui %0 : i1 to i32
    %c0_i32_0 = arith.constant 0 : i32
    %2 = arith.cmpi ne, %1, %c0_i32_0 : i32
    scf.if %2 {
      %cst_25 = arith.constant 0.000000e+00 : f32
      %51 = vector.broadcast %cst_25 : f32 to vector<4x128xf32>
      %c0_26 = arith.constant 0 : index
      %c0_27 = arith.constant 0 : index
      %c0_28 = arith.constant 0 : index
      %c0_29 = arith.constant 0 : index
      %52 = vector.load %arg5[%c0_26, %c0_27, %c0_28, %c0_29] : memref<1x1x4x128xf32, #tpu.memory_space<vmem>>, vector<1x1x4x128xf32>
      %53 = vector.shape_cast %52 : vector<1x1x4x128xf32> to vector<4x128xf32>
      %54 = vector.shape_cast %51 : vector<4x128xf32> to vector<1x1x4x128xf32>
      tpu.vector_store %arg5[%c0_26, %c0_27, %c0_28, %c0_29], %54 {strides = array<i32>} : memref<1x1x4x128xf32, #tpu.memory_space<vmem>>, vector<1x1x4x128xf32>,
      %cst_30 = arith.constant 0.000000e+00 : f32
      %55 = vector.broadcast %cst_30 : f32 to vector<4x128xf32>
      %c0_31 = arith.constant 0 : index
      %c0_32 = arith.constant 0 : index
      %c0_33 = arith.constant 0 : index
      %c0_34 = arith.constant 0 : index
      %56 = vector.load %arg6[%c0_31, %c0_32, %c0_33, %c0_34] : memref<1x1x4x128xf32, #tpu.memory_space<vmem>>, vector<1x1x4x128xf32>
      %57 = vector.shape_cast %56 : vector<1x1x4x128xf32> to vector<4x128xf32>
      %58 = vector.shape_cast %55 : vector<4x128xf32> to vector<1x1x4x128xf32>
      tpu.vector_store %arg6[%c0_31, %c0_32, %c0_33, %c0_34], %58 {strides = array<i32>} : memref<1x1x4x128xf32, #tpu.memory_space<vmem>>, vector<1x1x4x128xf32>,
    } else {
    }
    %c0 = arith.constant 0 : index
    %c0_1 = arith.constant 0 : index
    %c0_2 = arith.constant 0 : index
    %3 = vector.load %arg3[%c0, %c0_1, %c0_2] : memref<1x4x256xf32, #tpu.memory_space<vmem>>, vector<1x4x256xf32>
    %4 = vector.shape_cast %3 : vector<1x4x256xf32> to vector<4x256xf32>
    %c0_3 = arith.constant 0 : index
    %c0_4 = arith.constant 0 : index
    %c0_5 = arith.constant 0 : index
    %5 = vector.load %arg4[%c0_3, %c0_4, %c0_5] : memref<1x1x256xi32, #tpu.memory_space<vmem>>, vector<1x1x256xi32>
    %6 = vector.shape_cast %5 : vector<1x1x256xi32> to vector<1x256xi32>
    %cst = arith.constant dense<0xFF800000> : vector<256xf32>
    %7 = vector.multi_reduction <maximumf>, %4, %cst [0] : vector<4x256xf32> to vector<256xf32>
    %8 = vector.shape_cast %7 : vector<256xf32> to vector<1x256xf32>
    %9 = vector.broadcast %8 : vector<1x256xf32> to vector<4x256xf32>
    %10 = arith.subf %4, %9 : vector<4x256xf32>
    %11 = math.exp %10 : vector<4x256xf32>
    %cst_6 = arith.constant dense<0.000000e+00> : vector<256xf32>
    %12 = vector.multi_reduction <add>, %11, %cst_6 [0] : vector<4x256xf32> to vector<256xf32>
    %13 = vector.shape_cast %12 : vector<256xf32> to vector<1x256xf32>
    %14 = tpu.reciprocal %13 {approx = true} : vector<1x256xf32> -> vector<1x256xf32>
    %15 = arith.mulf %13, %14 : vector<1x256xf32>
    %cst_7 = arith.constant 2.000000e+00 : f32
    %16 = vector.broadcast %cst_7 : f32 to vector<1x256xf32>
    %17 = arith.subf %16, %15 : vector<1x256xf32>
    %18 = arith.mulf %14, %17 : vector<1x256xf32>
    %19 = vector.broadcast %18 : vector<1x256xf32> to vector<4x256xf32>
    %20 = arith.mulf %11, %19 : vector<4x256xf32>
    %21 = tpu.iota {dimensions = array<i32: 0>} : vector<4x1xi32>
    %22 = vector.broadcast %6 : vector<1x256xi32> to vector<4x256xi32>
    %23 = vector.broadcast %21 : vector<4x1xi32> to vector<4x256xi32>
    %24 = arith.cmpi eq, %22, %23 : vector<4x256xi32>
    %cst_8 = arith.constant 0.000000e+00 : f32
    %25 = vector.broadcast %cst_8 : f32 to vector<4x256xf32>
    %26 = arith.select %24, %20, %25 : vector<4x256xi1>, vector<4x256xf32>
    %27 = arith.extui %24 : vector<4x256xi1> to vector<4x256xi32>
    %28 = arith.sitofp %27 : vector<4x256xi32> to vector<4x256xf32>
    %c0_9 = arith.constant 0 : index
    %c0_10 = arith.constant 0 : index
    %c0_11 = arith.constant 0 : index
    %c0_12 = arith.constant 0 : index
    %29 = vector.load %arg5[%c0_9, %c0_10, %c0_11, %c0_12] : memref<1x1x4x128xf32, #tpu.memory_space<vmem>>, vector<1x1x4x128xf32>
    %30 = vector.shape_cast %29 : vector<1x1x4x128xf32> to vector<4x128xf32>
    %c0_13 = arith.constant 0 : index
    %c0_14 = arith.constant 0 : index
    %c0_15 = arith.constant 0 : index
    %c0_16 = arith.constant 0 : index
    %31 = vector.load %arg6[%c0_13, %c0_14, %c0_15, %c0_16] : memref<1x1x4x128xf32, #tpu.memory_space<vmem>>, vector<1x1x4x128xf32>
    %32 = vector.shape_cast %31 : vector<1x1x4x128xf32> to vector<4x128xf32>
    %33 = vector.extract_strided_slice %26 {offsets = [0, 0], sizes = [4, 128], strides = [1, 1]} : vector<4x256xf32> to vector<4x128xf32>
    %34 = arith.addf %30, %33 : vector<4x128xf32>
    %35 = vector.extract_strided_slice %20 {offsets = [0, 0], sizes = [4, 128], strides = [1, 1]} : vector<4x256xf32> to vector<4x128xf32>
    %36 = vector.extract_strided_slice %28 {offsets = [0, 0], sizes = [4, 128], strides = [1, 1]} : vector<4x256xf32> to vector<4x128xf32>
    %37 = arith.addf %35, %36 : vector<4x128xf32>
    %38 = arith.addf %32, %37 : vector<4x128xf32>
    %39 = vector.extract_strided_slice %26 {offsets = [0, 128], sizes = [4, 128], strides = [1, 1]} : vector<4x256xf32> to vector<4x128xf32>
    %40 = arith.addf %34, %39 : vector<4x128xf32>
    %41 = vector.extract_strided_slice %20 {offsets = [0, 128], sizes = [4, 128], strides = [1, 1]} : vector<4x256xf32> to vector<4x128xf32>
    %42 = vector.extract_strided_slice %28 {offsets = [0, 128], sizes = [4, 128], strides = [1, 1]} : vector<4x256xf32> to vector<4x128xf32>
    %43 = arith.addf %41, %42 : vector<4x128xf32>
    %44 = arith.addf %38, %43 : vector<4x128xf32>
    %c0_17 = arith.constant 0 : index
    %c0_18 = arith.constant 0 : index
    %c0_19 = arith.constant 0 : index
    %c0_20 = arith.constant 0 : index
    %45 = vector.load %arg5[%c0_17, %c0_18, %c0_19, %c0_20] : memref<1x1x4x128xf32, #tpu.memory_space<vmem>>, vector<1x1x4x128xf32>
    %46 = vector.shape_cast %45 : vector<1x1x4x128xf32> to vector<4x128xf32>
    %47 = vector.shape_cast %40 : vector<4x128xf32> to vector<1x1x4x128xf32>
    tpu.vector_store %arg5[%c0_17, %c0_18, %c0_19, %c0_20], %47 {strides = array<i32>} : memref<1x1x4x128xf32, #tpu.memory_space<vmem>>, vector<1x1x4x128xf32>,
    %c0_21 = arith.constant 0 : index
    %c0_22 = arith.constant 0 : index
    %c0_23 = arith.constant 0 : index
    %c0_24 = arith.constant 0 : index
    %48 = vector.load %arg6[%c0_21, %c0_22, %c0_23, %c0_24] : memref<1x1x4x128xf32, #tpu.memory_space<vmem>>, vector<1x1x4x128xf32>
    %49 = vector.shape_cast %48 : vector<1x1x4x128xf32> to vector<4x128xf32>
    %50 = vector.shape_cast %44 : vector<4x128xf32> to vector<1x1x4x128xf32>
    tpu.vector_store %arg6[%c0_21, %c0_22, %c0_23, %c0_24], %50 {strides = array<i32>} : memref<1x1x4x128xf32, #tpu.memory_space<vmem>>, vector<1x1x4x128xf32>,
    return
  }
  func.func @transform_0(%arg0: i32, %arg1: i32, %arg2: i32) -> (i32, i32, i32) {
    %c1_i32 = arith.constant 1 : i32
    %0 = arith.muli %arg1, %c1_i32 : i32
    %1 = arith.addi %0, %arg2 : i32
    %c0_i32 = arith.constant 0 : i32
    %c0_i32_0 = arith.constant 0 : i32
    return %arg0, %c0_i32, %1 : i32, i32, i32
  }
  func.func @transform_1(%arg0: i32, %arg1: i32, %arg2: i32) -> (i32, i32, i32) {
    %c1_i32 = arith.constant 1 : i32
    %0 = arith.muli %arg1, %c1_i32 : i32
    %1 = arith.addi %0, %arg2 : i32
    %c0_i32 = arith.constant 0 : i32
    %c0_i32_0 = arith.constant 0 : i32
    return %arg0, %c0_i32, %1 : i32, i32, i32
  }
  func.func @transform_2(%arg0: i32, %arg1: i32, %arg2: i32) -> (i32, i32, i32, i32) {
    %c0_i32 = arith.constant 0 : i32
    %c0_i32_0 = arith.constant 0 : i32
    %c0_i32_1 = arith.constant 0 : i32
    return %arg0, %arg1, %c0_i32, %c0_i32_0 : i32, i32, i32, i32
  }
  func.func @transform_3(%arg0: i32, %arg1: i32, %arg2: i32) -> (i32, i32, i32, i32) {
    %c0_i32 = arith.constant 0 : i32
    %c0_i32_0 = arith.constant 0 : i32
    %c0_i32_1 = arith.constant 0 : i32
    return %arg0, %arg1, %c0_i32, %c0_i32_0 : i32, i32, i32, i32
  }
}

</mosaic_0001>

<bundles_post_ra>
// kernel: _lambda_.1
= control target key start
LH: loop header
LB: loop body
LE: loop exit
PB: predicated region body
PF: predicated region fallthrough
CT: control target
= control target key end

     0   :  { %s602_s12 = smov 0   ;;  %s604_s13 = smov 0   ;;  %s674_s0 = inlined_call_operand.vmem [shape: f32[2,4,256], index: 0, kind: input, shape index: {}]   ;;  %s675_s1 = inlined_call_operand.vmem [shape: s32[2,1,256], index: 1, kind: input, shape index: {}]   ;;  %s676_s2 = inlined_call_operand.vmem [shape: f32[2,1,4,128], index: 2, kind: output, shape index: {0}]   ;;  %s677_s3 = inlined_call_operand.vmem [shape: f32[2,1,4,128], index: 3, kind: output, shape index: {1}]  }
   0x1   :  { %s606_s14 = smov 0  }
   0x2 LB: > { %s33_s15 = sadd.s32 1, %s575_s13  ;;  %p514_p0 = scmp.ge.s32.totalorder %s579_s14, 1  ;;  %s579_s14 = sphi %s606_s14, %s14_s14   ;;  %s575_s13 = sphi %s604_s13, %s679_s13   ;;  %s571_s12 = sphi %s602_s12, %s678_s12  }
   0x3   : > { %p35_p1 = scmp.ge.s32.totalorder %s33_s15, 2  ;;  %p194_p2 = scmp.lt.s32.totalorder %s579_s14, 3 }
   0x5   : > { %s681_s15 = smov (%p35_p1, %s33_s15), 0  ;;  %p195_p3 = pnand %p514_p0, %p194_p2 }
   0x6   : > { %p243_p4 = scmp.lt.s32.totalorder (!%p195_p3), %s571_s12, 1  ;;  %v341_v0 = vlaneseq (!%p195_p3)  ;;  %vm289_vm0 = vcmask (!%p195_p3), 1043456   ;;  %v581_v10 = vmov (!%p195_p3), 0.0  }
   0x7   : > { %198 = sbr.rel (%p195_p3) target bundleno = 93 (0x5d), region = 28 }
   0x8   : > { %v620_v1 = vshrl.u32 (!%p195_p3), %v341_v0, 7 }
   0xa   : > { %v349_v2 = vsub.s32 (!%p195_p3), 1, %v620_v1  ;;  %v345_v3 = vsub.s32 (!%p195_p3), 0, %v620_v1 }
   0xe   : > { %s683_s12 = smov (!%p243_p4, %s571_s12), 1 }
   0xf   : > { %s524_s16 = sshll.u32 %s683_s12, 3  ;;  %s517_s17 = sshll.u32 %s683_s12, 1 }
  0x10   : > { %s250_s20 = scalar_lea.vmem %s674_s0, %s524_s16  ;;  %s261_s23 = scalar_lea.vmem %s675_s1, %s517_s17 }
  0x11   : > { %s518_s24 = sshll.u32 %s683_s12, 2  ;;  %v284_v4 = vld [vmem:[%s250_s20] sm:$0xff] }
  0x12   : > { %v285_v5 = vld [vmem:[%s261_s23] sm:$0x3]  ;;  %s633_s27 = scalar_lea.vmem %s676_s2, %s518_s24  ;;  %v287_v6 = vcombine.high %v284_v4, %v284_v4  ;;  %v290_v7 = vsel %vm289_vm0, %v284_v4, -inf  ;;  %s641_s30 = scalar_lea.vmem %s677_s3, %s518_s24 }
  0x13   : > { %v636_v8 = vrot.slane %v285_v5, %v349_v2  ;;  %v346_v9 = vrot.slane %v285_v5, %v345_v3  ;;  %282 = vst [vmem:[%s633_s27] sm:$0xf] %v581_v10  ;;  %v291_v11 = vrot.slane %v290_v7, 4  ;;  %283 = vst [vmem:[%s641_s30] sm:$0xf] %v581_v10 }
  0x14   : > { %v297_v12 = vsel %vm289_vm0, %v287_v6, -inf }
  0x15   : > { %vm352_vm1 = vcmp.eq.s32.totalorder %v636_v8, %v620_v1  ;;  %vm351_vm2 = vcmp.eq.s32.totalorder %v346_v9, %v620_v1  ;;  %v292_v13 = vmax.f32 %v290_v7, %v291_v11  ;;  %v298_v14 = vrot.slane %v297_v12, 4 }
  0x16   : > { %v521_v15 = vsel %vm352_vm1, 1.0, %v581_v10  ;;  %v520_v16 = vsel %vm351_vm2, 1.0, %v581_v10 }
  0x17   : > { %v293_v17 = vrot.slane %v292_v13, 2  ;;  %v299_v18 = vmax.f32 %v297_v12, %v298_v14 }
  0x19   : > { %v294_v19 = vmax.f32 %v292_v13, %v293_v17  ;;  %v300_v20 = vrot.slane %v299_v18, 2 }
  0x1a   : > { %v362_v55 = vld [vmem:[%s633_s27] sm:$0xf] }
  0x1b   : > { %v295_v21 = vrot.slane %v294_v19, 1  ;;  %v301_v22 = vmax.f32 %v299_v18, %v300_v20  ;;  %v363_v56 = vld [vmem:[%s641_s30] sm:$0xf] }
  0x1d   : > { %v296_v23 = vmax.f32 %v294_v19, %v295_v21  ;;  %v302_v24 = vrot.slane %v301_v22, 1 }
  0x1f   : > { %v303_v25 = vmax.f32 %v301_v22, %v302_v24 }
  0x21   : > { %v306_v26 = vcombine.low %v296_v23, %v303_v25 }
  0x23   : > { %v308_v27 = vsub.f32 %v284_v4, %v306_v26 }
  0x25   : > { %v309_v28 = vmul.f32 1.442695, %v308_v27 }
  0x27   : > { %551 = vpow2.f32 %v309_v28 }
  0x31   : > { %v552_v29 = vpop.eup %551 }
  0x32   : > { %v312_v30 = vcombine.high %v552_v29, %v552_v29  ;;  %v314_v31 = vsel %vm289_vm0, %v552_v29, 0.0 }
  0x33   : > { %v315_v32 = vrot.slane %v314_v31, 4 }
  0x34   : > { %v321_v33 = vsel %vm289_vm0, %v312_v30, 0.0 }
  0x35   : > { %v316_v34 = vadd.f32 %v315_v32, %v314_v31  ;;  %v322_v35 = vrot.slane %v321_v33, 4 }
  0x37   : > { %v317_v36 = vrot.slane %v316_v34, 2  ;;  %v323_v37 = vadd.f32 %v322_v35, %v321_v33 }
  0x39   : > { %v324_v38 = vrot.slane %v323_v37, 2  ;;  %v318_v39 = vadd.f32 %v317_v36, %v316_v34 }
  0x3b   : > { %v319_v40 = vrot.slane %v318_v39, 1  ;;  %v325_v41 = vadd.f32 %v324_v38, %v323_v37 }
  0x3d   : > { %v320_v42 = vadd.f32 %v319_v40, %v318_v39  ;;  %v326_v43 = vrot.slane %v325_v41, 1 }
  0x3f   : > { %v327_v44 = vadd.f32 %v326_v43, %v325_v41  ;;  %553 = vrcp.f32 %v320_v42 }
  0x41   : > { %555 = vrcp.f32 %v327_v44 }
  0x49   : > { %v554_v45 = vpop.eup %553 }
  0x4a   : > { %v330_v46 = vmul.f32 %v554_v45, %v320_v42 }
  0x4b   : > { %v556_v47 = vpop.eup %555 }
  0x4c   : > { %v331_v48 = vmul.f32 %v556_v47, %v327_v44  ;;  %v332_v49 = vsub.f32 2.0, %v330_v46 }
  0x4e   : > { %v333_v50 = vsub.f32 2.0, %v331_v48  ;;  %v334_v51 = vmul.f32 %v554_v45, %v332_v49 }
  0x50   : > { %v335_v52 = vmul.f32 %v556_v47, %v333_v50 }
  0x52   : > { %v338_v53 = vcombine.low %v334_v51, %v335_v52 }
  0x54   : > { %v340_v54 = vmul.f32 %v552_v29, %v338_v53 }
  0x56   : > { %v354_v57 = vcombine.high %v340_v54, %v340_v54  ;;  %v356_v58 = vsel %vm351_vm2, %v340_v54, 0.0  ;;  %v365_v59 = vadd.f32 %v520_v16, %v340_v54  ;;  %v368_v60 = vrot.slane %v340_v54, 4 }
  0x57   : > { %v364_v61 = vadd.f32 %v362_v55, %v356_v58 }
  0x58   : > { %v357_v62 = vsel %vm352_vm1, %v354_v57, 0.0  ;;  %v366_v63 = vadd.f32 %v365_v59, %v363_v56  ;;  %v370_v0 = vadd.f32 %v521_v15, %v368_v60 }
  0x59   : > { %v367_v2 = vadd.f32 %v364_v61, %v357_v62 }
  0x5a   : > { %v371_v3 = vadd.f32 %v370_v0, %v366_v63 }
  0x5b   : > { %372 = vst [vmem:[%s633_s27] sm:$0xf] %v367_v2 }
  0x5c   : > { %373 = vst [vmem:[%s641_s30] sm:$0xf] %v371_v3 }
  0x5d PF: > { %s14_s14 = sadd.s32 1, %s579_s14   ;;  %s678_s12 = smov %s575_s13 }
  0x5e   : > { %p11_p5 = scmp.ge.s32.totalorder %s14_s14, 4   ;;  %s679_s13 = smov %s681_s15 }
  0x60   :  { %13 = sbr.rel (!%p11_p5) target bundleno = 2 (0x2), region = 77 }

</bundles_post_ra>
